<compile_context>
chip_gen: v7x
topology: tpu7x:2x2x1
jax: 0.10.0
libtpu: 0.0.40
codegen_flags: <defaults>
</compile_context>

<pallas_src>
import functools

import jax
import jax.numpy as jnp
from jax.experimental import pallas as pl
from jax.experimental.pallas import tpu as pltpu


def _round_up(x, m):
    return (x + m - 1) // m * m


# ------------------------------ kernels -------------------------------------

def _two_layer_acc(x, w1, b1, w2, compute_dtype):
    """f32 accumulator of relu(x@W1+b1) @ W2 for one (tm, tn) tile."""
    # Layer 1: f32 accumulation on the MXU, f32 bias + relu on the VPU.
    h = jnp.dot(x, w1, preferred_element_type=jnp.float32)
    h = jnp.maximum(h + b1, 0.0)
    h = h.astype(compute_dtype)            # no-op in the f32 path
    # Layer 2: f32 accumulation on the MXU.
    return jnp.dot(h, w2, preferred_element_type=jnp.float32)


def _mlp_kernel(x_ref, w1_ref, b1_ref, w2_ref, b2_ref, o_ref, *, compute_dtype):
    """o = sigmoid(relu(x@W1+b1) @ W2_tile + b2_tile)   (dense-weight path).

    x_ref:(tm,K)  w1_ref:(K,H)  b1_ref:(1,H)  w2_ref:(H,tn)  b2_ref:(1,tn)
    """
    acc = _two_layer_acc(x_ref[...], w1_ref[...], b1_ref[...], w2_ref[...],
                         compute_dtype)
    o_ref[...] = jax.nn.sigmoid(acc + b2_ref[...]).astype(o_ref.dtype)


def _mlp_kernel_w2_int8(x_ref, w1_ref, b1_ref, w2q_ref, w2s_ref, b2_ref, o_ref,
                        *, compute_dtype):
    """Weight-only int8 W2: dequant values to compute_dtype before the MXU,
    per-column scale folded into the f32 epilogue (before the bias/sigmoid)."""
    w2 = w2q_ref[...].astype(jnp.float32).astype(compute_dtype)
    acc = _two_layer_acc(x_ref[...], w1_ref[...], b1_ref[...], w2, compute_dtype)
    o_ref[...] = jax.nn.sigmoid(acc * w2s_ref[...] + b2_ref[...]).astype(o_ref.dtype)


# --------------------------- parameter prep ---------------------------------

def prepare_params(params, *, compute_dtype=jnp.bfloat16, quantize_w2=False,
                   tn_target=2048):
    """One-time parameter preparation (hoisted out of the per-call forward).

    Pads W2/b2 along N (to a multiple of 128 only, tiled by tn), casts the
    weights to the MXU operand dtype (bf16 default) and optionally quantizes
    W2 to int8 with per-column scales.  Doing this once at init removes a full
    HBM->HBM pad+cast of W2 (~the same traffic as the kernel) from every call.
    """
    w1, b1, w2, b2 = params
    K, H = w1.shape
    H2, N = w2.shape
    assert H == H2 and b1.shape == (H,) and b2.shape == (N,)

    # --- choose the output-feature tiling (lane-dense, small padding) -------
    n_pad128 = _round_up(N, 128)
    n_tiles = pl.cdiv(n_pad128, tn_target)
    if n_pad128 >= 256:
        # Keep >=2 tiles on the "parallel" N axis so both v7x TensorCores
        # (and both per-TC HBM ports) get work even at batch tile count 1.
        n_tiles = max(n_tiles, 2)
    tn = _round_up(pl.cdiv(n_pad128, n_tiles), 128)
    n_tiles = pl.cdiv(n_pad128, tn)
    n_pad = n_tiles * tn                       # waste < 128 * n_tiles columns

    if n_pad != N:
        w2 = jnp.pad(w2, ((0, 0), (0, n_pad - N)))
        b2 = jnp.pad(b2, ((0, n_pad - N),))

    w1p = w1.astype(compute_dtype)             # tiny, VMEM-resident weight
    b1_2d = b1.reshape(1, H).astype(jnp.float32)
    b2_2d = b2.reshape(1, n_pad).astype(jnp.float32)

    if quantize_w2:
        # Per-column absmax int8 quantization (weight-only).  Best bytes/col on
        # v5e/v6e; also valid on v7x because dequant happens before the MXU.
        absmax = jnp.max(jnp.abs(w2), axis=0, keepdims=True)
        scale = jnp.maximum(absmax, 1e-30) / 127.0
        w2_store = jnp.clip(jnp.round(w2 / scale), -127, 127).astype(jnp.int8)
        w2_scale = scale.astype(jnp.float32)
    else:
        w2_store = w2.astype(compute_dtype)
        w2_scale = None

    return dict(w1=w1p, b1=b1_2d, w2=w2_store, w2_scale=w2_scale, b2=b2_2d,
                in_features=K, hidden=H, n=N, n_pad=n_pad, tn=tn,
                compute_dtype=compute_dtype)


# ------------------------------ forward -------------------------------------

def tangent_net_forward(x, prepped, *, tm=None, out_dtype=None):
    """Full TangentNet forward: sigmoid(relu(x@W1+b1) @ W2 + b2).

    x: [..., in_features]; prepped: output of prepare_params().
    out_dtype: optional output dtype (e.g. jnp.bfloat16 to halve the output
    writeback, which dominates HBM traffic at large batch)."""
    w1, b1, w2, b2 = prepped["w1"], prepped["b1"], prepped["w2"], prepped["b2"]
    w2_scale = prepped["w2_scale"]
    K, H = prepped["in_features"], prepped["hidden"]
    N, N_pad, tn = prepped["n"], prepped["n_pad"], prepped["tn"]
    compute_dtype = prepped["compute_dtype"]

    orig_shape = x.shape
    if x.ndim != 2:
        x = x.reshape(-1, orig_shape[-1])
    M = x.shape[0]
    assert x.shape[1] == K
    if out_dtype is None:
        out_dtype = x.dtype

    # Batch tile: >=16 rows keeps bf16 operands on whole (16,128) vregs.
    sub = 8 if compute_dtype == jnp.float32 else 16
    if tm is None:
        tm = min(128, _round_up(M, sub))
    M_pad = _round_up(M, tm)

    # Cast x to the MXU operand dtype ONCE here (not per grid step), then pad.
    x = x.astype(compute_dtype)
    if M_pad != M:
        x = jnp.pad(x, ((0, M_pad - M), (0, 0)))

    quantized = w2_scale is not None
    if quantized:
        kernel = functools.partial(_mlp_kernel_w2_int8, compute_dtype=compute_dtype)
    else:
        kernel = functools.partial(_mlp_kernel, compute_dtype=compute_dtype)

    # Grid: output-feature tiles outermost so each W2/b2 tile is DMA'd from
    # HBM exactly once; batch tiles innermost (x tiles are tiny and cheap to
    # re-read).  Both axes write disjoint output tiles -> fully "parallel".
    grid = (N_pad // tn, M_pad // tm)

    in_specs = [
        pl.BlockSpec((tm, K), lambda j, i: (i, 0)),    # x tile
        pl.BlockSpec((K, H), lambda j, i: (0, 0)),     # W1 (VMEM-resident)
        pl.BlockSpec((1, H), lambda j, i: (0, 0)),     # b1 (resident)
        pl.BlockSpec((H, tn), lambda j, i: (0, j)),    # W2 tile (streamed once)
    ]
    operands = [x, w1, b1, w2]
    if quantized:
        in_specs.append(pl.BlockSpec((1, tn), lambda j, i: (0, j)))   # W2 col scale
        operands.append(w2_scale)
    in_specs.append(pl.BlockSpec((1, tn), lambda j, i: (0, j)))       # b2 tile
    operands.append(b2)

    y = pl.pallas_call(
        kernel,
        out_shape=jax.ShapeDtypeStruct((M_pad, N_pad), out_dtype),
        grid_spec=pltpu.PrefetchScalarGridSpec(
            num_scalar_prefetch=0,
            grid=grid,
            in_specs=in_specs,
            out_specs=pl.BlockSpec((tm, tn), lambda j, i: (i, j)),
        ),
        compiler_params=pltpu.CompilerParams(
            dimension_semantics=("parallel", "parallel"),
            vmem_limit_bytes=32 * 1024 * 1024),
    )(*operands)

    y = y[:M, :N]
    return y.reshape(orig_shape[:-1] + (N,))


# ------------------------ init + pure-JAX reference -------------------------

def init_params(key, in_features, hidden, out_features, dtype=jnp.float32):
    """Deterministic init matching the module: Xavier-normal W, bias = 0.01.
    Weights are stored as [in, out] (transpose of PyTorch's [out, in])."""
    k1, k2 = jax.random.split(key)

    def xavier_normal(k, fan_in, fan_out):
        std = jnp.sqrt(2.0 / (fan_in + fan_out))
        return (jax.random.normal(k, (fan_in, fan_out), dtype) * std).astype(dtype)

    w1 = xavier_normal(k1, in_features, hidden)
    b1 = jnp.full((hidden,), 0.01, dtype)
    w2 = xavier_normal(k2, hidden, out_features)
    b2 = jnp.full((out_features,), 0.01, dtype)
    return (w1, b1, w2, b2)


def reference_forward(x, params):
    w1, b1, w2, b2 = params
    hp = jax.lax.Precision.HIGHEST
    h = jnp.maximum(jnp.dot(x, w1, precision=hp) + b1, 0.0)
    return jax.nn.sigmoid(jnp.dot(h, w2, precision=hp) + b2)


if __name__ == "__main__":
    # Small shapes consistent with the module (defaults in=200, hidden=128,
    # out=10000 -- out scaled down here).  Deliberately non-(8,128)-aligned
    # batch and a 2-tile N to exercise padding + multi-tile parallel grid.
    batch = 6
    in_features = 200
    hidden = 128
    out_features = 2000

    key = jax.random.PRNGKey(0)
    kx, kp = jax.random.split(key)
    x = jax.random.normal(kx, (batch, in_features), jnp.float32)
    raw_params = init_params(kp, in_features, hidden, out_features)
    y_ref = reference_forward(x, raw_params)

    # 1) f32 weight path (tight-tolerance correctness check).
    p_f32 = prepare_params(raw_params, compute_dtype=jnp.float32)
    y = jax.block_until_ready(tangent_net_forward(x, p_f32))
    assert y.shape == (batch, out_features)
    assert jnp.allclose(y, y_ref, atol=2e-4, rtol=2e-4), "f32 mismatch vs reference"

    # 2) Default path: bf16 weights/operands, f32 accum + f32 epilogue.
    #    (Recommended on v5e/v6e/v7x; loose tol covers bf16 operand rounding.)
    p_bf16 = prepare_params(raw_params)
    y_bf16 = jax.block_until_ready(tangent_net_forward(x, p_bf16))
    assert y_bf16.shape == (batch, out_features)
    assert jnp.allclose(y_bf16, y_ref, atol=2e-2, rtol=2e-2), "bf16 mismatch"

    # 3) Weight-only int8 W2 path (4x less streamed weight bytes; best lever
    #    on v5e/v6e, still valid on v7x since dequant precedes the MXU).
    p_i8 = prepare_params(raw_params, quantize_w2=True)
    y_i8 = jax.block_until_ready(tangent_net_forward(x, p_i8))
    assert y_i8.shape == (batch, out_features)
    assert jnp.allclose(y_i8, y_ref, atol=5e-2, rtol=5e-2), "int8 mismatch"

    print("KERNEL_OK")
</pallas_src>

<mosaic_0001>
module attributes {stable_mosaic.version = 11 : i64} {
  func.func @_mlp_kernel(%arg0: i32, %arg1: i32, %arg2: memref<8x200xf32, #tpu.memory_space<vmem>>, %arg3: memref<200x128xf32, #tpu.memory_space<vmem>>, %arg4: memref<1x128xf32, #tpu.memory_space<vmem>>, %arg5: memref<128x1024xf32, #tpu.memory_space<vmem>>, %arg6: memref<1x1024xf32, #tpu.memory_space<vmem>>, %arg7: memref<8x1024xf32, #tpu.memory_space<vmem>>) attributes {dimension_semantics = [#tpu.dimension_semantics<parallel>, #tpu.dimension_semantics<parallel>], iteration_bounds = array<i64: 2, 1>, scalar_prefetch = 0 : i64, scratch_operands = 0 : i64, tpu.core_type = #tpu.core_type<tc>, window_params = [{transform_indices = @transform_0, window_bounds = array<i64: 8, 200>}, {pipeline_mode = #tpu.pipeline_mode<synchronous>, transform_indices = @transform_1, window_bounds = array<i64: 200, 128>}, {pipeline_mode = #tpu.pipeline_mode<synchronous>, transform_indices = @transform_2, window_bounds = array<i64: 1, 128>}, {transform_indices = @transform_3, window_bounds = array<i64: 128, 1024>}, {transform_indices = @transform_4, window_bounds = array<i64: 1, 1024>}, {transform_indices = @transform_5, window_bounds = array<i64: 8, 1024>}]} {
    %c0 = arith.constant 0 : index
    %c0_0 = arith.constant 0 : index
    %0 = vector.load %arg2[%c0, %c0_0] : memref<8x200xf32, #tpu.memory_space<vmem>>, vector<8x200xf32>
    %c0_1 = arith.constant 0 : index
    %c0_2 = arith.constant 0 : index
    %1 = vector.load %arg3[%c0_1, %c0_2] : memref<200x128xf32, #tpu.memory_space<vmem>>, vector<200x128xf32>
    %c0_3 = arith.constant 0 : index
    %c0_4 = arith.constant 0 : index
    %2 = vector.load %arg4[%c0_3, %c0_4] : memref<1x128xf32, #tpu.memory_space<vmem>>, vector<1x128xf32>
    %c0_5 = arith.constant 0 : index
    %c0_6 = arith.constant 0 : index
    %3 = vector.load %arg5[%c0_5, %c0_6] : memref<128x1024xf32, #tpu.memory_space<vmem>>, vector<128x1024xf32>
    %cst = arith.constant dense<0.000000e+00> : vector<8x128xf32>
    %4 = tpu.matmul %0, %1, %cst {dimension_numbers = #tpu.dot_dimension_numbers<[1], [0], [0], [1], [0, 0, 1, 1], [], []>} : vector<8x200xf32>, vector<200x128xf32>, vector<8x128xf32> -> vector<8x128xf32>
    %5 = vector.broadcast %2 : vector<1x128xf32> to vector<8x128xf32>
    %6 = arith.addf %4, %5 : vector<8x128xf32>
    %cst_7 = arith.constant 0.000000e+00 : f32
    %7 = vector.broadcast %cst_7 : f32 to vector<8x128xf32>
    %8 = arith.maximumf %6, %7 : vector<8x128xf32>
    %cst_8 = arith.constant dense<0.000000e+00> : vector<8x1024xf32>
    %9 = tpu.matmul %8, %3, %cst_8 {dimension_numbers = #tpu.dot_dimension_numbers<[1], [0], [0], [1], [0, 0, 1, 1], [], []>} : vector<8x128xf32>, vector<128x1024xf32>, vector<8x1024xf32> -> vector<8x1024xf32>
    %c0_9 = arith.constant 0 : index
    %c0_10 = arith.constant 0 : index
    %10 = vector.load %arg6[%c0_9, %c0_10] : memref<1x1024xf32, #tpu.memory_space<vmem>>, vector<1x1024xf32>
    %11 = vector.broadcast %10 : vector<1x1024xf32> to vector<8x1024xf32>
    %12 = arith.addf %9, %11 : vector<8x1024xf32>
    %13 = arith.negf %12 : vector<8x1024xf32>
    %14 = math.exp %13 : vector<8x1024xf32>
    %cst_11 = arith.constant 1.000000e+00 : f32
    %15 = vector.broadcast %cst_11 : f32 to vector<8x1024xf32>
    %16 = arith.addf %15, %14 : vector<8x1024xf32>
    %17 = arith.divf %15, %16 : vector<8x1024xf32>
    %c0_12 = arith.constant 0 : index
    %c0_13 = arith.constant 0 : index
    %18 = vector.load %arg7[%c0_12, %c0_13] : memref<8x1024xf32, #tpu.memory_space<vmem>>, vector<8x1024xf32>
    tpu.vector_store %arg7[%c0_12, %c0_13], %17 {strides = array<i32>} : memref<8x1024xf32, #tpu.memory_space<vmem>>, vector<8x1024xf32>,
    return
  }
  func.func @transform_0(%arg0: i32, %arg1: i32) -> (i32, i32) {
    %c0_i32 = arith.constant 0 : i32
    %c0_i32_0 = arith.constant 0 : i32
    return %arg1, %c0_i32 : i32, i32
  }
  func.func @transform_1(%arg0: i32, %arg1: i32) -> (i32, i32) {
    %c0_i32 = arith.constant 0 : i32
    %c0_i32_0 = arith.constant 0 : i32
    %c0_i32_1 = arith.constant 0 : i32
    return %c0_i32, %c0_i32_0 : i32, i32
  }
  func.func @transform_2(%arg0: i32, %arg1: i32) -> (i32, i32) {
    %c0_i32 = arith.constant 0 : i32
    %c0_i32_0 = arith.constant 0 : i32
    %c0_i32_1 = arith.constant 0 : i32
    return %c0_i32, %c0_i32_0 : i32, i32
  }
  func.func @transform_3(%arg0: i32, %arg1: i32) -> (i32, i32) {
    %c0_i32 = arith.constant 0 : i32
    %c0_i32_0 = arith.constant 0 : i32
    return %c0_i32, %arg0 : i32, i32
  }
  func.func @transform_4(%arg0: i32, %arg1: i32) -> (i32, i32) {
    %c0_i32 = arith.constant 0 : i32
    %c0_i32_0 = arith.constant 0 : i32
    return %c0_i32, %arg0 : i32, i32
  }
  func.func @transform_5(%arg0: i32, %arg1: i32) -> (i32, i32) {
    %c0_i32 = arith.constant 0 : i32
    return %arg1, %arg0 : i32, i32
  }
}

</mosaic_0001>

<bundles_post_ra>
// kernel: tpu_custom_call.1
= control target key start
LH: loop header
LB: loop body
LE: loop exit
PB: predicated region body
PF: predicated region fallthrough
CT: control target
= control target key end

     0   :  { %s2134_s0 = inlined_call_operand.hbm [shape: f32[8,200], index: 0, kind: input, shape index: {}]   ;;  %s2135_s1 = inlined_call_operand.hbm [shape: f32[200,128], index: 1, kind: input, shape index: {}]   ;;  %s2136_s2 = inlined_call_operand.vmem [shape: f32[1,128], index: 2, kind: input, shape index: {}]   ;;  %s2137_s3 = inlined_call_operand.hbm [shape: f32[128,2048], index: 3, kind: input, shape index: {}]   ;;  %s2138_s4 = inlined_call_operand.hbm [shape: f32[1,2048], index: 4, kind: input, shape index: {}]   ;;  %s2139_s5 = inlined_call_operand.hbm [shape: f32[8,2048], index: 5, kind: output, shape index: {}]  }
   0x1   :  { %2151 = sst [smem:[#allocation17_spill]] %s2134_s0 }
   0x2   :  { %2152 = sst [smem:[#allocation18_spill]] %s2137_s3 }
   0x3   :  { %10 = vsyncpa [#allocation3], 0 }
   0x4   :  { %11 = vsyncpa [#allocation6], 0 }
   0x5   :  { %12 = vsyncpa [#allocation4], 0 }
   0x6   :  { %14 = vsyncpa [#allocation4 + $0x1], 0  ;;  %s1663_s18 = smov 0   ;;  %s1665_s19 = smov 0  }
   0x7   :  { %s1667_s20 = smov 0   ;;  %s1669_s21 = smov 0  }
   0x8   :  { %s1671_s22 = smov 0   ;;  %s1673_s23 = smov 0  }
   0x9 LB: > { %s1694_s24 = sadd.s32 4294967295, %s1619_s23   ;;  %s1087_s25 = sadd.s32 4294967294, %s1619_s23   ;;  %s1619_s23 = sphi %s1673_s23, %s20_s23   ;;  %s1615_s22 = sphi %s1671_s22, %s2191_s22   ;;  %s1611_s21 = sphi %s1669_s21, %s2190_s21   ;;  %s1607_s20 = sphi %s1667_s20, %s2189_s20   ;;  %s1603_s19 = sphi %s1665_s19, %s2188_s19   ;;  %s1599_s18 = sphi %s1663_s18, %s2187_s18  }
   0xa   : > { %s107_s26 = sadd.s32 1, %s1607_s20  ;;  %p114_p0 = scmp.ne.s32.totalorder %s1607_s20, %s1603_s19 }
   0xb   : > { %p115_p1 = scmp.eq.s32.totalorder %s1619_s23, 0  ;;  %p120_p2 = scmp.ne.s32.totalorder %s1603_s19, %s1599_s18 }
   0xc   : > { %p2140_p3 = scmp.eq.s32.totalorder %s1694_s24, 0  ;;  %p172_p4 = scmp.eq.s32.totalorder %s1694_s24, 1 }
   0xd   : > { %p1705_p5 = por %p115_p1, %p114_p0  ;;  %p178_p6 = scmp.eq.s32.totalorder %s1087_s25, 1 }
   0xe   : > { %p1711_p7 = por %p2140_p3, %p120_p2  ;;  %p1715_p8 = por %p172_p4, %p114_p0 }
   0xf   : > { %p1719_p9 = por %p178_p6, %p120_p2  ;;  %p1088_p10 = scmp.ge.s32.totalorder %s1619_s23, 1 }
  0x10   : > { %s2154_s28 = scalar_select %p1711_p7, 1, 0 }
  0x11   : > { %s2155_s29 = scalar_select %p1715_p8, 1, 0 }
  0x12   : > { %s2156_s30 = scalar_select %p1719_p9, 1, 0 }
  0x13   : > { %p185_p11 = scmp.lt.s32.totalorder %s1619_s23, 3  ;;  %s1621_s7 = smov [#allocation2]  }
  0x14   : > { %2157 = sst [smem:[#allocation14_spill]] %s2156_s30  ;;  %s201_s8 = sshll.u32 %s1621_s7, 4  ;;  %s202_s8 = int_to_ptr.vmem [resolvable:$true] %s201_s8 }
  0x15   : > { %p1726_p13 = pnand %p1088_p10, %p185_p11  ;;  %p1320_p1 = scmp.lt.s32.totalorder %s1619_s23, 2 }
  0x16   : > { %s32_s11 = sadd.s32 1, %s1615_s22  ;;  %s2162_s0 = sld [smem:[#allocation17_spill]] }
  0x17   : > { %s2158_s6 = scalar_select %p1726_p13, 1, 0 }
  0x18   : > { %p1300_p0 = pneg %p1726_p13  ;;  %p1735_p4 = pnand %p1320_p1, %p1705_p5 }
  0x19   : > { %p1746_p6 = scmp.ge.s32.totalorder %s32_s11, 2 }
  0x1a   : > { %s2159_s9 = scalar_select %p1735_p4, 1, 0 }
  0x1b   : > { %p1741_p2 = pnand %p1300_p0, %p2140_p3 }
  0x1c   : > { %s2161_s12 = scalar_select %p1746_p6, 1, 0 }
  0x1d   : > { %s1413_s16 = scalar_lea.hbm %s2162_s0, 256  ;;  %p2147_p10 = pneg %p1741_p2 }
  0x1e   : > { %p1414_p5 = scmp.ne.s32.totalorder %s2162_s0, %s1413_s16  ;;  %p1420_p0 = scmp.lt.u32.totalorder %s1413_s16, %s2162_s0 }
  0x20   : > { %p1416_p11 = pnand %p2147_p10, %p1414_p5 }
  0x22   : > { %p1417_p1 = pneg %p1416_p11 }
  0x24   : > { %p1422_p12 = pnand %p1420_p0, %p1417_p1 }
  0x26   : > { %1425 = shalt.err (!%p1422_p12)
}
  0x27   : > { %s1426_s13 = scalar_lea.vmem %s202_s8, 256  ;;  %p1434_p7 = scmp.lt.s32.totalorder %s202_s8, %s202_s8 }
  0x28   : > { %p1427_p3 = scmp.ne.s32.totalorder %s202_s8, %s1426_s13  ;;  %p1435_p13 = scmp.lt.s32.totalorder %s1426_s13, %s1426_s13 }
  0x2a   : > { %p1429_p9 = pnand %p1427_p3, %p2147_p10  ;;  %p1436_p4 = por %p1435_p13, %p1434_p7 }
  0x2c   : > { %p1430_p8 = pneg %p1429_p9 }
  0x2e   : > { %p1437_p6 = pnand %p1436_p4, %p1430_p8 }
  0x30   : > { %1440 = shalt.err (!%p1437_p6)
}
  0x31   : > { %1303 = dma.hbm_to_vmem [thread:$0]  (!%p1741_p2), %s2162_s0, 256, %s202_s8, [#allocation3]  }
  0x32   : > { %p2163_p3 = scmp.ne.s32.totalorder %s2161_s12, 0  ;;  %s2146_s13 = sand.u32 1, %s1607_s20  }
  0x33   : > { %s1092_s17 = sshll.u32 %s2146_s13, 10  ;;  %s1119_s25 = sshll.u32 %s1615_s22, 10 }
  0x34   : > { %s2193_s11 = smov (%p2163_p3, %s32_s11), 0  ;;  %s232_s27 = scalar_lea.vmem [#allocation7], %s1092_s17 }
  0x35   : > { %2164 = sst [smem:[#allocation15_spill]] %s2193_s11  ;;  %s104_s16 = ssub.s32 %s1615_s22, %s2193_s11 }
  0x36   : > { %p105_p7 = scmp.eq.s32.totalorder %s104_s16, 0  ;;  %s239_s7 = sshll.u32 %s232_s27, 4  ;;  %s1793_s7 = int_to_ptr.vmem [resolvable:$true] %s239_s7 }
  0x37   : > { %s2166_s3 = sld [smem:[#allocation18_spill]]  ;;  %s2167_s12 = sand.u32 1, %s1619_s23  }
  0x38   : > { %s1786_s14 = scalar_select %p105_p7, %s1607_s20, %s107_s26  }
  0x39   : > { %s1797_s13 = scalar_lea.sflag [#allocation3], %s2167_s12  ;;  %p2168_p9 = scmp.ne.s32.totalorder %s2159_s9, 0 }
  0x3a   : > { %2165 = sst [smem:[#allocation16_spill]] %s1786_s14 }
  0x3b   : > { %p2149_p12 = pneg %p2168_p9 }
  0x3d   : > { %s1791_s8 = scalar_lea.hbm %s2166_s3, %s1119_s25  ;;  %s1446_s17 = scalar_lea.hbm %s2166_s3, 32768 }
  0x3e   : > { %s1441_s16 = scalar_lea.hbm %s1791_s8, 16384  ;;  %p1447_p6 = scmp.lt.u32.totalorder %s1791_s8, %s2166_s3 }
  0x3f   : > { %p1442_p8 = scmp.ne.s32.totalorder %s1791_s8, %s1441_s16  ;;  %p1448_p5 = scmp.lt.u32.totalorder %s1446_s17, %s1441_s16 }
  0x40   : > { %p1450_p1 = scmp.lt.u32.totalorder %s1441_s16, %s1791_s8 }
  0x41   : > { %p1444_p13 = pnand %p2149_p12, %p1442_p8  ;;  %p1449_p11 = por %p1448_p5, %p1447_p6 }
  0x43   : > { %p1445_p4 = pneg %p1444_p13  ;;  %p1451_p0 = por %p1450_p1, %p1449_p11 }
  0x45   : > { %p1452_p3 = pnand %p1451_p0, %p1445_p4 }
  0x47   : > { %1455 = shalt.err (!%p1452_p3)
}
  0x48   : > { %s1456_s15 = scalar_lea.vmem %s1793_s7, 16384  ;;  %s1622_s12 = smov [#allocation7]  }
  0x49   : > { %p1457_p7 = scmp.ne.s32.totalorder %s1793_s7, %s1456_s15  ;;  %s1461_s26 = sshll.u32 %s1622_s12, 4  ;;  %s1462_s26 = int_to_ptr.vmem [resolvable:$false] %s1461_s26 }
  0x4a   : > { %s1463_s30 = scalar_lea.vmem %s1462_s26, 32768  ;;  %p1464_p10 = scmp.lt.s32.totalorder %s1793_s7, %s1462_s26 }
  0x4b   : > { %p1459_p8 = pnand %p1457_p7, %p2149_p12  ;;  %p1465_p6 = scmp.lt.s32.totalorder %s1463_s30, %s1456_s15 }
  0x4d   : > { %p1460_p13 = pneg %p1459_p8  ;;  %p1466_p5 = por %p1465_p6, %p1464_p10 }
  0x4f   : > { %p1467_p11 = pnand %p1466_p5, %p1460_p13 }
  0x51   : > { %1470 = shalt.err (!%p1467_p11)
}
  0x52   : > { %s1623_s16 = smov 2048   ;;  %s1624_s17 = smov 1024  }
  0x53   : > { %s1625_s25 = smov 64   ;;  %s1626_s27 = smov [#allocation5]  }
  0x54   : > { %1310 = dma.hbm_to_vmem [thread:$0]  (!%p2168_p9), %s1791_s8, 16384, %s1793_s7, %s1797_s13, %s1623_s16, %s1624_s17, %s1625_s25  }
  0x55   : > { %s211_s0 = sshll.u32 %s1626_s27, 4  ;;  %s1471_s15 = scalar_lea.hbm %s2135_s1, 3200  ;;  %s212_s0 = int_to_ptr.vmem [resolvable:$true] %s211_s0 }
  0x56   : > { %p1472_p10 = scmp.ne.s32.totalorder %s2135_s1, %s1471_s15  ;;  %p2169_p4 = pneg %p1741_p2 }
  0x57   : > { %p1478_p3 = scmp.lt.u32.totalorder %s1471_s15, %s2135_s1 }
  0x58   : > { %p1474_p1 = pnand %p1472_p10, %p2169_p4 }
  0x5a   : > { %p1475_p0 = pneg %p1474_p1 }
  0x5c   : > { %p1480_p7 = pnand %p1478_p3, %p1475_p0 }
  0x5e   : > { %1483 = shalt.err (!%p1480_p7)
}
  0x5f   : > { %s1484_s7 = scalar_lea.vmem %s212_s0, 3200  ;;  %p2170_p13 = pmov %p2169_p4 }
  0x60   : > { %p1485_p8 = scmp.ne.s32.totalorder %s212_s0, %s1484_s7  ;;  %p1492_p11 = scmp.lt.s32.totalorder %s212_s0, %s212_s0 }
  0x61   : > { %p1493_p12 = scmp.lt.s32.totalorder %s1484_s7, %s1484_s7 }
  0x62   : > { %p1487_p6 = pnand %p1485_p8, %p2170_p13 }
  0x63   : > { %p1494_p9 = por %p1493_p12, %p1492_p11 }
  0x64   : > { %p1488_p5 = pneg %p1487_p6 }
  0x66   : > { %p1495_p4 = pnand %p1494_p9, %p1488_p5 }
  0x68   : > { %1498 = shalt.err (!%p1495_p4)
}
  0x69   : > { %s1627_s3 = smov 128   ;;  %s1628_s11 = smov 8  }
  0x6a   : > { %1306 = dma.hbm_to_vmem [thread:$0]  (!%p1741_p2), %s2135_s1, 3200, %s212_s0, [#allocation6], %s1627_s3, %s1627_s3, %s1628_s11  }
  0x6b   : > { %s2171_s16 = sand.u32 1, %s1607_s20   ;;  %s1120_s25 = sshll.u32 %s1615_s22, 7 }
  0x6c   : > { %s1095_s17 = sshll.u32 %s2171_s16, 3  ;;  %s1851_s15 = scalar_lea.hbm %s2138_s4, %s1120_s25 }
  0x6d   : > { %s253_s26 = scalar_lea.vmem [#allocation8], %s1095_s17  ;;  %s1499_s10 = scalar_lea.hbm %s1851_s15, 128 }
  0x6e   : > { %s261_s30 = sshll.u32 %s253_s26, 4  ;;  %p1500_p9 = scmp.ne.s32.totalorder %s1851_s15, %s1499_s10  ;;  %s262_s30 = int_to_ptr.vmem [resolvable:$true] %s261_s30 }
  0x6f   : > { %p2172_p12 = scmp.ne.s32.totalorder %s2159_s9, 0  ;;  %s1504_s3 = scalar_lea.hbm %s2138_s4, 256 }
  0x70   : > { %p1505_p0 = scmp.lt.u32.totalorder %s1851_s15, %s2138_s4  ;;  %p1506_p3 = scmp.lt.u32.totalorder %s1504_s3, %s1499_s10 }
  0x71   : > { %p2173_p10 = pneg %p2172_p12  ;;  %p1508_p8 = scmp.lt.u32.totalorder %s1499_s10, %s1851_s15 }
  0x72   : > { %p1507_p7 = por %p1506_p3, %p1505_p0 }
  0x73   : > { %p1502_p2 = pnand %p1500_p9, %p2173_p10 }
  0x74   : > { %p1509_p13 = por %p1508_p8, %p1507_p7 }
  0x75   : > { %p1503_p1 = pneg %p1502_p2 }
  0x77   : > { %p1510_p6 = pnand %p1509_p13, %p1503_p1 }
  0x79   : > { %1513 = shalt.err (!%p1510_p6)
}
  0x7a   : > { %s1514_s8 = scalar_lea.vmem %s262_s30, 128  ;;  %p2174_p11 = pmov %p2173_p10 }
  0x7b   : > { %p1515_p5 = scmp.ne.s32.totalorder %s262_s30, %s1514_s8  ;;  %s1629_s16 = smov [#allocation8]  }
  0x7c   : > { %s1519_s17 = sshll.u32 %s1629_s16, 4  ;;  %s1520_s17 = int_to_ptr.vmem [resolvable:$false] %s1519_s17 }
  0x7d   : > { %p1517_p4 = pnand %p1515_p5, %p2174_p11  ;;  %s1521_s25 = scalar_lea.vmem %s1520_s17, 256 }
  0x7e   : > { %p1522_p10 = scmp.lt.s32.totalorder %s262_s30, %s1520_s17  ;;  %p1523_p2 = scmp.lt.s32.totalorder %s1521_s25, %s1514_s8 }
  0x7f   : > { %p1518_p9 = pneg %p1517_p4 }
  0x80   : > { %p1524_p0 = por %p1523_p2, %p1522_p10 }
  0x82   : > { %p1525_p3 = pnand %p1524_p0, %p1518_p9 }
  0x84   : > { %1528 = shalt.err (!%p1525_p3)
}
  0x85   : > { %1313 = dma.hbm_to_vmem [thread:$0]  (!%p2172_p12), %s1851_s15, 128, %s262_s30, %s1797_s13  }
  0x86   : > { %p2175_p1 = scmp.ne.s32.totalorder %s2158_s6, 0 }
  0x87   : > { %p2176_p7 = scmp.eq.s32.totalorder (!%p2175_p1), %s1694_s24, 0 }
  0x88   : > { %270 = sbr.rel (%p2175_p1) target bundleno = 739 (0x2e3), region = 40 }
  0x8f   : > { %1582 = dma.done.wait (%p2176_p7), [#allocation3], 256   ;;  %p2177_p8 = pmov %p2176_p7 }
  0x90   : > { %p2178_p13 = pmov %p2176_p7 }
  0x91   : > { %1584 = vsyncadd (%p2177_p8), [#allocation3], 4294967040 }
  0x92   : > { %1586 = dma.done.wait (%p2178_p13), [#allocation6], 3200   ;;  %p2179_p6 = pmov %p2176_p7 }
  0x93   : > { %s280_s9 = sand.u32 1, %s1694_s24   ;;  %s1885_s13 = sand.u32 1, %s1603_s19  }
  0x94   : > { %1588 = vsyncadd (%p2179_p6), [#allocation6], 4294964096  ;;  %s1101_s6 = sshll.u32 %s1885_s13, 10  ;;  %s281_s27 = scalar_lea.sflag [#allocation3], %s280_s9 }
  0x95   : > { %s1888_s12 = scalar_lea.vmem [#allocation7], %s1101_s6  ;;  %p2180_p12 = scmp.ne.s32.totalorder %s2154_s28, 0 }
  0x97   : > { %1590 = dma.done.wait (%p2180_p12), %s281_s27, 16512  }
  0x98   : > { %1592 = vsyncadd (%p2180_p12), %s281_s27, 4294950784  ;;  %v1630_v0 = vmov 0.0|0.0   ;;  %v1631_v1 = vmov 0.0   ;;  %v330_v2 = vld [vmem:[#allocation5] sm:$0xff]  ;;  %v331_v3 = vld [vmem:[#allocation5 + $0x8] sm:$0xff]  ;;  %vm490_vm0 = vcmask 588800  }
  0x99   : > { %1122 = vmatprep.subr.bf16.mxu0 %v1630_v0  ;;  %671 = vmatprep.mubr.f32.mxu1 %v1631_v1  ;;  %v332_v4 = vld [vmem:[#allocation5 + $0x10] sm:$0xff]  ;;  %v1123_v5 = vpack.c.bf16 %v331_v3, %v330_v2  ;;  %v333_v6 = vld [vmem:[#allocation5 + $0x18] sm:$0xff]  ;;  %v334_v8 = vld [vmem:[#allocation5 + $0x20] sm:$0xff]  ;;  %s1102_s15 = sshll.u32 %s1885_s13, 3  ;;  %s1103_s30 = sshll.u32 %s1885_s13, 6 }
  0x9a   : > { %v1126_v7 = vpack.c.bf16 %v333_v6, %v332_v4  ;;  %v335_v9 = vld [vmem:[#allocation5 + $0x28] sm:$0xff]  ;;  %v336_v11 = vld [vmem:[#allocation5 + $0x30] sm:$0xff]  ;;  %v337_v12 = vld [vmem:[#allocation5 + $0x38] sm:$0xff]  ;;  %s293_s26 = scalar_lea.vmem [#allocation8], %s1102_s15  ;;  %s2064_s10 = scalar_lea.vmem [#allocation9], %s1103_s30 }
  0x9b   : > { %1124 = vmatpush1.bf16.msra.mxu0 %v1123_v5  ;;  %v1129_v10 = vpack.c.bf16 %v335_v9, %v334_v8  ;;  %v329_v13 = vld [vmem:[#allocation2 + $0x8] sm:$0xff]  ;;  %v357_v14 = vld [vmem:[%s1888_s12 + $0x8] sm:$0xff]  ;;  %v356_v16 = vld [vmem:[%s1888_s12] sm:$0xff]  ;;  %v1132_v19 = vpack.c.bf16 %v337_v12, %v336_v11  ;;  %s1121_s0 = sshll.u32 %s1611_s21, 10  ;;  %s964_s7 = sshll.u32 %s2064_s10, 4  ;;  %s2085_s7 = int_to_ptr.vmem [resolvable:$true] %s964_s7 }
  0x9c   : > { %1125 = vmatprep.subr.bf16.mxu0 %v1630_v0  ;;  %1105 = vmatprep.mubr.msk.f32.mxu0 %vm490_vm0, %v329_v13  ;;  %v365_v15 = vld [vmem:[%s1888_s12 + $0x48] sm:$0xff]  ;;  %v364_v18 = vld [vmem:[%s1888_s12 + $0x40] sm:$0xff]  ;;  %v338_v20 = vld [vmem:[#allocation5 + $0x40] sm:$0xff]  ;;  %s2083_s14 = scalar_lea.hbm %s2139_s5, %s1121_s0  ;;  %s948_s8 = scalar_lea.sflag [#allocation4], %s1885_s13 }
  0x9d   : > { %v1158_v17 = vpack.c.bf16 %v365_v15, %v357_v14  ;;  %v339_v21 = vld [vmem:[#allocation5 + $0x48] sm:$0xff]  ;;  %v1160_v22 = vpack.c.bf16 %v364_v18, %v356_v16  ;;  %v373_v23 = vld [vmem:[%s1888_s12 + $0x88] sm:$0xff]  ;;  %v341_v36 = vld [vmem:[#allocation5 + $0x58] sm:$0xff]  ;;  %s1529_s16 = scalar_lea.vmem %s2085_s7, 1024  ;;  %p2181_p11 = scmp.ne.s32.totalorder %s2155_s29, 0 }
  0x9e   : > { %v381_v24 = vld [vmem:[%s1888_s12 + $0xc8] sm:$0xff]  ;;  %v372_v25 = vld [vmem:[%s1888_s12 + $0x80] sm:$0xff]  ;;  %v1135_v31 = vpack.c.bf16 %v339_v21, %v338_v20  ;;  %v342_v45 = vld [vmem:[#allocation5 + $0x60] sm:$0xff]  ;;  %p1530_p5 = scmp.ne.s32.totalorder %s2085_s7, %s1529_s16  ;;  %s1632_s21 = smov [#allocation9]  }
  0x9f   : > { %1127 = vmatpush1.bf16.msra.mxu0 %v1126_v7  ;;  %1159 = vmatprep.subr.bf16.mxu1 %v1158_v17  ;;  %v380_v26 = vld [vmem:[%s1888_s12 + $0xc0] sm:$0xff]  ;;  %v1162_v27 = vpack.c.bf16 %v381_v24, %v373_v23  ;;  %v389_v29 = vld [vmem:[%s1888_s12 + $0x108] sm:$0xff]  ;;  %v345_v56 = vld [vmem:[#allocation5 + $0x78] sm:$0xff]  ;;  %s1533_s17 = sshll.u32 %s1632_s21, 4  ;;  %s1534_s17 = int_to_ptr.vmem [resolvable:$false] %s1533_s17 }
  0xa0   : > { %1128 = vmatprep.subr.bf16.mxu0 %v1630_v0  ;;  %1161 = vmatpush1.bf16.msra.mxu1 %v1160_v22  ;;  %v1164_v28 = vpack.c.bf16 %v380_v26, %v372_v25  ;;  %v397_v30 = vld [vmem:[%s1888_s12 + $0x148] sm:$0xff]  ;;  %v388_v33 = vld [vmem:[%s1888_s12 + $0x100] sm:$0xff]  ;;  %v346_v2 = vld [vmem:[#allocation5 + $0x80] sm:$0xff]  ;;  %p1531_p4 = pnand %p1530_p5, %p2181_p11  ;;  %s1535_s25 = scalar_lea.vmem %s1534_s17, 2048 }
  0xa1   : > { %1163 = vmatprep.subr.bf16.mxu1 %v1162_v27  ;;  %v1166_v32 = vpack.c.bf16 %v397_v30, %v389_v29  ;;  %v396_v34 = vld [vmem:[%s1888_s12 + $0x140] sm:$0xff]  ;;  %v340_v35 = vld [vmem:[#allocation5 + $0x50] sm:$0xff]  ;;  %v350_v13 = vld [vmem:[#allocation5 + $0xa0] sm:$0xff]  ;;  %p1536_p10 = scmp.lt.s32.totalorder %s2085_s7, %s1534_s17  ;;  %p1537_p2 = scmp.lt.s32.totalorder %s1535_s25, %s1529_s16 }
  0xa2   : > { %v1168_v37 = vpack.c.bf16 %v396_v34, %v388_v33  ;;  %v405_v38 = vld [vmem:[%s1888_s12 + $0x188] sm:$0xff]  ;;  %v404_v41 = vld [vmem:[%s1888_s12 + $0x180] sm:$0xff]  ;;  %v1138_v43 = vpack.c.bf16 %v341_v36, %v340_v35  ;;  %v353_v17 = vld [vmem:[#allocation5 + $0xb8] sm:$0xff]  ;;  %p1532_p9 = pneg %p1531_p4 }
  0xa3   : > { %1130 = vmatpush1.bf16.msra.mxu0 %v1129_v10  ;;  %v413_v39 = vld [vmem:[%s1888_s12 + $0x1c8] sm:$0xff]  ;;  %v412_v42 = vld [vmem:[%s1888_s12 + $0x1c0] sm:$0xff]  ;;  %v349_v10 = vld [vmem:[#allocation5 + $0x98] sm:$0xff]  ;;  %p1538_p0 = por %p1537_p2, %p1536_p10 }
  0xa4   : > { %1131 = vmatprep.subr.bf16.mxu0 %v1630_v0  ;;  %1165 = vmatpush1.bf16.msra.mxu1 %v1164_v28  ;;  %v1170_v40 = vpack.c.bf16 %v413_v39, %v405_v38  ;;  %v421_v44 = vld [vmem:[%s1888_s12 + $0x208] sm:$0xff]  ;;  %v343_v46 = vld [vmem:[#allocation5 + $0x68] sm:$0xff]  ;;  %v1172_v48 = vpack.c.bf16 %v412_v42, %v404_v41  ;;  %v354_v25 = vld [vmem:[#allocation5 + $0xc0] sm:$0xff] }
  0xa5   : > { %1167 = vmatprep.subr.bf16.mxu1 %v1166_v32  ;;  %v429_v47 = vld [vmem:[%s1888_s12 + $0x248] sm:$0xff]  ;;  %v420_v50 = vld [vmem:[%s1888_s12 + $0x200] sm:$0xff]  ;;  %v1141_v52 = vpack.c.bf16 %v343_v46, %v342_v45  ;;  %p1539_p3 = pnand %p1538_p0, %p1532_p9 }
  0xa6   : > { %v1174_v49 = vpack.c.bf16 %v429_v47, %v421_v44  ;;  %v428_v51 = vld [vmem:[%s1888_s12 + $0x240] sm:$0xff]  ;;  %v437_v53 = vld [vmem:[%s1888_s12 + $0x288] sm:$0xff] }
  0xa7   : > { %1133 = vmatpush1.bf16.msra.mxu0 %v1132_v19  ;;  %v445_v54 = vld [vmem:[%s1888_s12 + $0x2c8] sm:$0xff]  ;;  %v1176_v57 = vpack.c.bf16 %v428_v51, %v420_v50  ;;  %v436_v59 = vld [vmem:[%s1888_s12 + $0x280] sm:$0xff] }
  0xa8   : > { %1134 = vmatprep.subr.bf16.mxu0 %v1630_v0  ;;  %1169 = vmatpush1.bf16.msra.mxu1 %v1168_v37  ;;  %v344_v55 = vld [vmem:[#allocation5 + $0x70] sm:$0xff]  ;;  %v1178_v58 = vpack.c.bf16 %v445_v54, %v437_v53  ;;  %v444_v60 = vld [vmem:[%s1888_s12 + $0x2c0] sm:$0xff] }
  0xa9   : > { %1171 = vmatprep.subr.bf16.mxu1 %v1170_v40  ;;  %v1144_v61 = vpack.c.bf16 %v345_v56, %v344_v55  ;;  %v453_v62 = vld [vmem:[%s1888_s12 + $0x308] sm:$0xff]  ;;  %v347_v3 = vld [vmem:[#allocation5 + $0x88] sm:$0xff]  ;;  %v1180_v4 = vpack.c.bf16 %v444_v60, %v436_v59 }
  0xaa   : > { %v461_v63 = vld [vmem:[%s1888_s12 + $0x348] sm:$0xff]  ;;  %v452_v6 = vld [vmem:[%s1888_s12 + $0x300] sm:$0xff]  ;;  %v1147_v8 = vpack.c.bf16 %v347_v3, %v346_v2 }
  0xab   : > { %1136 = vmatpush1.bf16.msra.mxu0 %v1135_v31  ;;  %v1182_v5 = vpack.c.bf16 %v461_v63, %v453_v62  ;;  %v460_v7 = vld [vmem:[%s1888_s12 + $0x340] sm:$0xff]  ;;  %v348_v9 = vld [vmem:[#allocation5 + $0x90] sm:$0xff] }
  0xac   : > { %1137 = vmatprep.subr.bf16.mxu0 %v1630_v0  ;;  %1173 = vmatpush1.bf16.msra.mxu1 %v1172_v48  ;;  %v1184_v11 = vpack.c.bf16 %v460_v7, %v452_v6  ;;  %v1150_v12 = vpack.c.bf16 %v349_v10, %v348_v9  ;;  %v351_v14 = vld [vmem:[#allocation5 + $0xa8] sm:$0xff]  ;;  %v352_v16 = vld [vmem:[#allocation5 + $0xb0] sm:$0xff] }
  0xad   : > { %1175 = vmatprep.subr.bf16.mxu1 %v1174_v49  ;;  %v1153_v15 = vpack.c.bf16 %v351_v14, %v350_v13  ;;  %v1156_v18 = vpack.c.bf16 %v353_v17, %v352_v16  ;;  %v361_v19 = vld [vmem:[%s1888_s12 + $0x28] sm:$0xff]  ;;  %v360_v21 = vld [vmem:[%s1888_s12 + $0x20] sm:$0xff]  ;;  %v367_v13 = vld [vmem:[%s1888_s12 + $0x58] sm:$0xff] }
  0xae   : > { %v369_v20 = vld [vmem:[%s1888_s12 + $0x68] sm:$0xff]  ;;  %v368_v22 = vld [vmem:[%s1888_s12 + $0x60] sm:$0xff]  ;;  %v358_v16 = vld [vmem:[%s1888_s12 + $0x10] sm:$0xff] }
  0xaf   : > { %1139 = vmatpush1.bf16.msra.mxu0 %v1138_v43  ;;  %v377_v23 = vld [vmem:[%s1888_s12 + $0xa8] sm:$0xff]  ;;  %v1222_v26 = vpack.c.bf16 %v369_v20, %v361_v19  ;;  %v1224_v28 = vpack.c.bf16 %v368_v22, %v360_v21  ;;  %v384_v30 = vld [vmem:[%s1888_s12 + $0xe0] sm:$0xff]  ;;  %v366_v17 = vld [vmem:[%s1888_s12 + $0x50] sm:$0xff] }
  0xb0   : > { %1140 = vmatprep.subr.bf16.mxu0 %v1630_v0  ;;  %1177 = vmatpush1.bf16.msra.mxu1 %v1176_v57  ;;  %v385_v24 = vld [vmem:[%s1888_s12 + $0xe8] sm:$0xff]  ;;  %v392_v35 = vld [vmem:[%s1888_s12 + $0x120] sm:$0xff]  ;;  %v375_v19 = vld [vmem:[%s1888_s12 + $0x98] sm:$0xff] }
  0xb1   : > { %1179 = vmatprep.subr.bf16.mxu1 %v1178_v58  ;;  %v328_v27 = vld [vmem:[#allocation2] sm:$0xff]  ;;  %v1226_v29 = vpack.c.bf16 %v385_v24, %v377_v23  ;;  %v400_v36 = vld [vmem:[%s1888_s12 + $0x160] sm:$0xff]  ;;  %v383_v20 = vld [vmem:[%s1888_s12 + $0xd8] sm:$0xff]  ;;  %v1192_v23 = vpack.c.bf16 %v366_v17, %v358_v16 }
  0xb2   : > { %v393_v31 = vld [vmem:[%s1888_s12 + $0x128] sm:$0xff]  ;;  %v1232_v39 = vpack.c.bf16 %v400_v36, %v392_v35  ;;  %v408_v41 = vld [vmem:[%s1888_s12 + $0x1a0] sm:$0xff]  ;;  %v394_v17 = vld [vmem:[%s1888_s12 + $0x130] sm:$0xff] }
  0xb3   : > { %1142 = vmatpush1.bf16.msra.mxu0 %v1141_v52  ;;  %v401_v32 = vld [vmem:[%s1888_s12 + $0x168] sm:$0xff]  ;;  %v416_v42 = vld [vmem:[%s1888_s12 + $0x1e0] sm:$0xff] }
  0xb4   : > { %1143 = vmatprep.subr.bf16.mxu0 %v1630_v0  ;;  %1181 = vmatpush1.bf16.msra.mxu1 %v1180_v4  ;;  %v1230_v34 = vpack.c.bf16 %v401_v32, %v393_v31  ;;  %v409_v37 = vld [vmem:[%s1888_s12 + $0x1a8] sm:$0xff]  ;;  %v1236_v45 = vpack.c.bf16 %v416_v42, %v408_v41  ;;  %v424_v47 = vld [vmem:[%s1888_s12 + $0x220] sm:$0xff]  ;;  %v390_v31 = vld [vmem:[%s1888_s12 + $0x110] sm:$0xff] }
  0xb5   : > { %1183 = vmatprep.subr.bf16.mxu1 %v1182_v5  ;;  %v417_v38 = vld [vmem:[%s1888_s12 + $0x1e8] sm:$0xff]  ;;  %v432_v48 = vld [vmem:[%s1888_s12 + $0x260] sm:$0xff]  ;;  %v398_v32 = vld [vmem:[%s1888_s12 + $0x150] sm:$0xff] }
  0xb6   : > { %v1234_v40 = vpack.c.bf16 %v417_v38, %v409_v37  ;;  %v425_v43 = vld [vmem:[%s1888_s12 + $0x228] sm:$0xff]  ;;  %v1240_v51 = vpack.c.bf16 %v432_v48, %v424_v47  ;;  %v440_v53 = vld [vmem:[%s1888_s12 + $0x2a0] sm:$0xff]  ;;  %v1200_v35 = vpack.c.bf16 %v398_v32, %v390_v31  ;;  %v406_v37 = vld [vmem:[%s1888_s12 + $0x190] sm:$0xff] }
  0xb7   : > { %1145 = vmatpush1.bf16.msra.mxu0 %v1144_v61  ;;  %v433_v44 = vld [vmem:[%s1888_s12 + $0x268] sm:$0xff]  ;;  %v448_v54 = vld [vmem:[%s1888_s12 + $0x2e0] sm:$0xff]  ;;  %v414_v38 = vld [vmem:[%s1888_s12 + $0x1d0] sm:$0xff] }
  0xb8   : > { %1146 = vmatprep.subr.bf16.mxu0 %v1630_v0  ;;  %1185 = vmatpush1.bf16.msra.mxu1 %v1184_v11  ;;  %v1238_v46 = vpack.c.bf16 %v433_v44, %v425_v43  ;;  %v441_v49 = vld [vmem:[%s1888_s12 + $0x2a8] sm:$0xff]  ;;  %v1244_v57 = vpack.c.bf16 %v448_v54, %v440_v53  ;;  %v456_v59 = vld [vmem:[%s1888_s12 + $0x320] sm:$0xff]  ;;  %v1204_v41 = vpack.c.bf16 %v414_v38, %v406_v37  ;;  %v422_v43 = vld [vmem:[%s1888_s12 + $0x210] sm:$0xff] }
  0xb9   : > { %v449_v50 = vld [vmem:[%s1888_s12 + $0x2e8] sm:$0xff]  ;;  %v464_v60 = vld [vmem:[%s1888_s12 + $0x360] sm:$0xff]  ;;  %v430_v44 = vld [vmem:[%s1888_s12 + $0x250] sm:$0xff] }
  0xba   : > { %v1242_v52 = vpack.c.bf16 %v449_v50, %v441_v49  ;;  %v457_v55 = vld [vmem:[%s1888_s12 + $0x328] sm:$0xff]  ;;  %v1248_v61 = vpack.c.bf16 %v464_v60, %v456_v59  ;;  %v468_v3 = vld [vmem:[%s1888_s12 + $0x380] sm:$0xff]  ;;  %v1208_v47 = vpack.c.bf16 %v430_v44, %v422_v43  ;;  %v438_v49 = vld [vmem:[%s1888_s12 + $0x290] sm:$0xff] }
  0xbb   : > { %1148 = vmatpush1.bf16.msra.mxu0 %v1147_v8  ;;  %v465_v56 = vld [vmem:[%s1888_s12 + $0x368] sm:$0xff]  ;;  %v476_v4 = vld [vmem:[%s1888_s12 + $0x3c0] sm:$0xff]  ;;  %v446_v50 = vld [vmem:[%s1888_s12 + $0x2d0] sm:$0xff] }
  0xbc   : > { %1149 = vmatprep.subr.bf16.mxu0 %v1630_v0  ;;  %v1246_v58 = vpack.c.bf16 %v465_v56, %v457_v55  ;;  %v469_v62 = vld [vmem:[%s1888_s12 + $0x388] sm:$0xff]  ;;  %v1188_v6 = vpack.c.bf16 %v476_v4, %v468_v3  ;;  %v472_v8 = vld [vmem:[%s1888_s12 + $0x3a0] sm:$0xff]  ;;  %v1212_v53 = vpack.c.bf16 %v446_v50, %v438_v49  ;;  %v454_v55 = vld [vmem:[%s1888_s12 + $0x310] sm:$0xff]  ;;  %v567_v49 = vlaneseq }
  0xbd   : > { %v477_v63 = vld [vmem:[%s1888_s12 + $0x3c8] sm:$0xff]  ;;  %v480_v9 = vld [vmem:[%s1888_s12 + $0x3e0] sm:$0xff]  ;;  %v462_v56 = vld [vmem:[%s1888_s12 + $0x350] sm:$0xff] }
  0xbe   : > { %v1186_v2 = vpack.c.bf16 %v477_v63, %v469_v62  ;;  %v473_v5 = vld [vmem:[%s1888_s12 + $0x3a8] sm:$0xff]  ;;  %v1252_v11 = vpack.c.bf16 %v480_v9, %v472_v8  ;;  %v1216_v59 = vpack.c.bf16 %v462_v56, %v454_v55  ;;  %v478_v62 = vld [vmem:[%s1888_s12 + $0x3d0] sm:$0xff]  ;;  %v363_v63 = vld [vmem:[%s1888_s12 + $0x38] sm:$0xff]  ;;  %v2049_v50 = vshrl.u32 %v567_v49, 7 }
  0xbf   : > { %1151 = vmatpush1.bf16.msra.mxu0 %v1150_v12  ;;  %v481_v7 = vld [vmem:[%s1888_s12 + $0x3e8] sm:$0xff]  ;;  %v359_v12 = vld [vmem:[%s1888_s12 + $0x18] sm:$0xff] }
  0xc0   : > { %1152 = vmatprep.subr.bf16.mxu0 %v1630_v0  ;;  %1187 = vmatprep.subr.bf16.mxu1 %v1186_v2  ;;  %v1250_v10 = vpack.c.bf16 %v481_v7, %v473_v5  ;;  %v1190_v14 = vpack.c.bf16 %v367_v13, %v359_v12  ;;  %v371_v2 = vld [vmem:[%s1888_s12 + $0x78] sm:$0xff]  ;;  %v362_v5 = vld [vmem:[%s1888_s12 + $0x30] sm:$0xff]  ;;  %v589_v55 = vsub.s32 5, %v2049_v50 }
  0xc1   : > { %1189 = vmatpush1.bf16.msra.mxu1 %v1188_v6  ;;  %v1254_v4 = vpack.c.bf16 %v371_v2, %v363_v63  ;;  %v370_v6 = vld [vmem:[%s1888_s12 + $0x70] sm:$0xff]  ;;  %v379_v7 = vld [vmem:[%s1888_s12 + $0xb8] sm:$0xff] }
  0xc2   : > { %1191 = vmatprep.subr.bf16.mxu1 %v1190_v14  ;;  %v387_v8 = vld [vmem:[%s1888_s12 + $0xf8] sm:$0xff]  ;;  %v1256_v9 = vpack.c.bf16 %v370_v6, %v362_v5  ;;  %v386_v12 = vld [vmem:[%s1888_s12 + $0xf0] sm:$0xff] }
  0xc3   : > { %1154 = vmatpush1.bf16.msra.mxu0 %v1153_v15  ;;  %v1104_v15 = vld [vmem:[%s2136_s2] ss:$0 sm:$0xff]  ;;  %v395_v13 = vld [vmem:[%s1888_s12 + $0x138] sm:$0xff] }
  0xc4   : > { %1155 = vmatprep.subr.bf16.mxu0 %v1630_v0  ;;  %v376_v0 = vld [vmem:[%s1888_s12 + $0xa0] sm:$0xff]  ;;  %v403_v14 = vld [vmem:[%s1888_s12 + $0x178] sm:$0xff] }
  0xc5   : > { %v1228_v33 = vpack.c.bf16 %v384_v30, %v376_v0  ;;  %v1262_v16 = vpack.c.bf16 %v403_v14, %v395_v13  ;;  %v451_v31 = vld [vmem:[%s1888_s12 + $0x2f8] sm:$0xff] }
  0xc6   : > { %v467_v37 = vld [vmem:[%s1888_s12 + $0x378] sm:$0xff] }
  0xc7   : > { %1157 = vmatpush1.bf16.msra.mxu0 %v1156_v18  ;;  %v483_v43 = vld [vmem:[%s1888_s12 + $0x3f8] sm:$0xff] }
  0xc8   : > { %542 = vmatprep.subr.mxu0 %v1631_v1 }
  0xcb   : > { %543 = vmatpush1.msra.mxu0 %v354_v25  ;;  %v1194_v25 = vpack.c.bf16 %v383_v20, %v375_v19  ;;  %v411_v19 = vld [vmem:[%s1888_s12 + $0x1b8] sm:$0xff] }
  0xcc   : > { %559 = vmatmul.mubr.f32.vlgmr.msra.gmra.mrb[0].mxu0 %v328_v27  ;;  %1223 = vmatprep.subr.bf16.mxu0 %v1222_v26  ;;  %v374_v26 = vld [vmem:[%s1888_s12 + $0x90] sm:$0xff]  ;;  %v419_v20 = vld [vmem:[%s1888_s12 + $0x1f8] sm:$0xff] }
  0xcd   : > { %1225 = vmatpush1.bf16.msra.mxu0 %v1224_v28  ;;  %813 = vmatprep.mubr.f32.mxu0 %v1631_v1  ;;  %v382_v27 = vld [vmem:[%s1888_s12 + $0xd0] sm:$0xff]  ;;  %v391_v28 = vld [vmem:[%s1888_s12 + $0x118] sm:$0xff] }
  0xce   : > { %1227 = vmatprep.subr.bf16.mxu0 %v1226_v29  ;;  %v399_v29 = vld [vmem:[%s1888_s12 + $0x158] sm:$0xff]  ;;  %v1196_v0 = vpack.c.bf16 %v382_v27, %v374_v26 }
  0xcf   : > { %v1198_v30 = vpack.c.bf16 %v399_v29, %v391_v28  ;;  %v427_v26 = vld [vmem:[%s1888_s12 + $0x238] sm:$0xff]  ;;  %v426_v29 = vld [vmem:[%s1888_s12 + $0x230] sm:$0xff] }
  0xd1   : > { %1229 = vmatpush1.bf16.msra.mxu0 %v1228_v33  ;;  %v407_v33 = vld [vmem:[%s1888_s12 + $0x198] sm:$0xff] }
  0xd2   : > { %1231 = vmatprep.subr.bf16.mxu0 %v1230_v34  ;;  %v415_v34 = vld [vmem:[%s1888_s12 + $0x1d8] sm:$0xff] }
  0xd3   : > { %v1202_v36 = vpack.c.bf16 %v415_v34, %v407_v33  ;;  %v442_v34 = vld [vmem:[%s1888_s12 + $0x2b0] sm:$0xff] }
  0xd5   : > { %1233 = vmatpush1.bf16.msra.mxu0 %v1232_v39  ;;  %v423_v39 = vld [vmem:[%s1888_s12 + $0x218] sm:$0xff] }
  0xd6   : > { %1235 = vmatprep.subr.bf16.mxu0 %v1234_v40  ;;  %v431_v40 = vld [vmem:[%s1888_s12 + $0x258] sm:$0xff] }
  0xd7   : > { %v1206_v42 = vpack.c.bf16 %v431_v40, %v423_v39  ;;  %v458_v40 = vld [vmem:[%s1888_s12 + $0x330] sm:$0xff] }
  0xd9   : > { %1237 = vmatpush1.bf16.msra.mxu0 %v1236_v45  ;;  %v439_v45 = vld [vmem:[%s1888_s12 + $0x298] sm:$0xff] }
  0xda   : > { %1239 = vmatprep.subr.bf16.mxu0 %v1238_v46  ;;  %v447_v46 = vld [vmem:[%s1888_s12 + $0x2d8] sm:$0xff] }
  0xdb   : > { %v1210_v48 = vpack.c.bf16 %v447_v46, %v439_v45  ;;  %v474_v46 = vld [vmem:[%s1888_s12 + $0x3b0] sm:$0xff] }
  0xdd   : > { %1241 = vmatpush1.bf16.msra.mxu0 %v1240_v51  ;;  %v455_v51 = vld [vmem:[%s1888_s12 + $0x318] sm:$0xff] }
  0xde   : > { %1243 = vmatprep.subr.bf16.mxu0 %v1242_v52  ;;  %v463_v52 = vld [vmem:[%s1888_s12 + $0x358] sm:$0xff] }
  0xdf   : > { %v1214_v54 = vpack.c.bf16 %v463_v52, %v455_v51  ;;  %v569_v51 = vsub.s32 0, %v2049_v50  ;;  %v585_v52 = vsub.s32 4, %v2049_v50 }
  0xe1   : > { %1245 = vmatpush1.bf16.msra.mxu0 %v1244_v57  ;;  %v471_v57 = vld [vmem:[%s1888_s12 + $0x398] sm:$0xff] }
  0xe2   : > { %1247 = vmatprep.subr.bf16.mxu0 %v1246_v58  ;;  %v479_v58 = vld [vmem:[%s1888_s12 + $0x3d8] sm:$0xff] }
  0xe3   : > { %v1218_v60 = vpack.c.bf16 %v479_v58, %v471_v57 }
  0xe5   : > { %1249 = vmatpush1.bf16.msra.mxu0 %v1248_v61  ;;  %v470_v61 = vld [vmem:[%s1888_s12 + $0x390] sm:$0xff] }
  0xe6   : > { %1251 = vmatprep.subr.bf16.mxu0 %v1250_v10  ;;  %v1220_v3 = vpack.c.bf16 %v478_v62, %v470_v61  ;;  %v1258_v10 = vpack.c.bf16 %v387_v8, %v379_v7 }
  0xe9   : > { %1253 = vmatpush1.bf16.msra.mxu0 %v1252_v11  ;;  %v378_v11 = vld [vmem:[%s1888_s12 + $0xb0] sm:$0xff] }
 0x19f   : > { %v560_v18 = vpop.f32.mrb[0].mxu0 }
 0x1a0   : > { %v561_v21 = vadd.f32 %v1104_v15, %v560_v18  ;;  %v562_v22 = vpop.f32.mrb[1].mxu0  ;;  %v1260_v15 = vpack.c.bf16 %v386_v12, %v378_v11  ;;  %v402_v18 = vld [vmem:[%s1888_s12 + $0x170] sm:$0xff] }
 0x1a1   : > { %v1266_v22 = vpack.c.bf16 %v419_v20, %v411_v19 }
 0x1a2   : > { %v1982_v24 = vmax.f32 %v561_v21, 0.0  ;;  %v1264_v21 = vpack.c.bf16 %v402_v18, %v394_v17  ;;  %v577_v17 = vsub.s32 2, %v2049_v50  ;;  %v581_v18 = vsub.s32 3, %v2049_v50 }
 0x1a4   : > { %672 = vmatmul.mubr.f32.vlgmr.msra.gmra.mrb[0].mxu1 %v1982_v24  ;;  %814 = vmatmul.mubr.f32.vlgmr.msra.gmra.mrb[2].mxu0 %v1982_v24 }
 0x1a5   : > { %1193 = vmatpush1.bf16.msra.mxu1 %v1192_v23  ;;  %742 = vmatprep.mubr.f32.mxu1 %v1631_v1  ;;  %v410_v23 = vld [vmem:[%s1888_s12 + $0x1b0] sm:$0xff] }
 0x1a6   : > { %1195 = vmatprep.subr.bf16.mxu1 %v1194_v25  ;;  %v418_v25 = vld [vmem:[%s1888_s12 + $0x1f0] sm:$0xff] }
 0x1a7   : > { %v1268_v27 = vpack.c.bf16 %v418_v25, %v410_v23 }
 0x1a9   : > { %1197 = vmatpush1.bf16.msra.mxu1 %v1196_v0  ;;  %v434_v0 = vld [vmem:[%s1888_s12 + $0x270] sm:$0xff] }
 0x1aa   : > { %1199 = vmatprep.subr.bf16.mxu1 %v1198_v30  ;;  %v443_v30 = vld [vmem:[%s1888_s12 + $0x2b8] sm:$0xff]  ;;  %v1272_v32 = vpack.c.bf16 %v434_v0, %v426_v29 }
 0x1ab   : > { %v1274_v33 = vpack.c.bf16 %v451_v31, %v443_v30 }
 0x1ad   : > { %1201 = vmatpush1.bf16.msra.mxu1 %v1200_v35  ;;  %v450_v35 = vld [vmem:[%s1888_s12 + $0x2f0] sm:$0xff] }
 0x1ae   : > { %1203 = vmatprep.subr.bf16.mxu1 %v1202_v36  ;;  %v459_v36 = vld [vmem:[%s1888_s12 + $0x338] sm:$0xff]  ;;  %v1276_v38 = vpack.c.bf16 %v450_v35, %v442_v34  ;;  %v593_v34 = vsub.s32 6, %v2049_v50  ;;  %v597_v35 = vsub.s32 7, %v2049_v50 }
 0x1af   : > { %v1278_v39 = vpack.c.bf16 %v467_v37, %v459_v36 }
 0x1b1   : > { %1205 = vmatpush1.bf16.msra.mxu1 %v1204_v41  ;;  %v466_v41 = vld [vmem:[%s1888_s12 + $0x370] sm:$0xff] }
 0x1b2   : > { %1207 = vmatprep.subr.bf16.mxu1 %v1206_v42  ;;  %v475_v42 = vld [vmem:[%s1888_s12 + $0x3b8] sm:$0xff]  ;;  %v1280_v44 = vpack.c.bf16 %v466_v41, %v458_v40 }
 0x1b3   : > { %v1282_v45 = vpack.c.bf16 %v483_v43, %v475_v42 }
 0x1b5   : > { %1209 = vmatpush1.bf16.msra.mxu1 %v1208_v47  ;;  %v482_v47 = vld [vmem:[%s1888_s12 + $0x3f0] sm:$0xff] }
 0x1b6   : > { %1211 = vmatprep.subr.bf16.mxu1 %v1210_v48  ;;  %v1284_v48 = vpack.c.bf16 %v482_v47, %v474_v46 }
 0x1b9   : > { %1213 = vmatpush1.bf16.msra.mxu1 %v1212_v53  ;;  %v2053_v53 = vld [vmem:[%s293_s26] sm:$0xff] }
 0x1ba   : > { %1215 = vmatprep.subr.bf16.mxu1 %v1214_v54  ;;  %v573_v54 = vsub.s32 1, %v2049_v50  ;;  %v570_v56 = vrot.slane %v2053_v53, %v569_v51  ;;  %v586_v57 = vrot.slane %v2053_v53, %v585_v52  ;;  %v590_v58 = vrot.slane %v2053_v53, %v589_v55 }
 0x1bb   : > { %v582_v23 = vrot.slane %v2053_v53, %v581_v18 }
 0x1bd   : > { %1217 = vmatpush1.bf16.msra.mxu1 %v1216_v59 }
 0x1be   : > { %1219 = vmatprep.subr.bf16.mxu1 %v1218_v60 }
 0x1c1   : > { %1221 = vmatpush1.bf16.msra.mxu1 %v1220_v3 }
 0x1c2   : > { %1255 = vmatprep.subr.bf16.mxu1 %v1254_v4 }
 0x1c4   : > { %743 = vmatmul.mubr.f32.vlgmr.msra.gmra.mrb[2].mxu1 %v1982_v24 }
 0x1c5   : > { %1257 = vmatpush1.bf16.msra.mxu1 %v1256_v9  ;;  %884 = vmatprep.mubr.f32.mxu1 %v1631_v1  ;;  %v435_v1 = vld [vmem:[%s1888_s12 + $0x278] sm:$0xff] }
 0x1c6   : > { %1259 = vmatprep.subr.bf16.mxu1 %v1258_v10  ;;  %v1270_v28 = vpack.c.bf16 %v435_v1, %v427_v26 }
 0x1c9   : > { %1261 = vmatpush1.bf16.msra.mxu1 %v1260_v15 }
 0x1ca   : > { %1263 = vmatprep.subr.bf16.mxu1 %v1262_v16 }
 0x1cd   : > { %1265 = vmatpush1.bf16.msra.mxu1 %v1264_v21  ;;  %v578_v21 = vrot.slane %v2053_v53, %v577_v17 }
 0x1ce   : > { %1267 = vmatprep.subr.bf16.mxu1 %v1266_v22 }
 0x1d1   : > { %1269 = vmatpush1.bf16.msra.mxu1 %v1268_v27 }
 0x1d2   : > { %1271 = vmatprep.subr.bf16.mxu1 %v1270_v28 }
 0x1d5   : > { %1273 = vmatpush1.bf16.msra.mxu1 %v1272_v32 }
 0x1d6   : > { %1275 = vmatprep.subr.bf16.mxu1 %v1274_v33 }
 0x1d9   : > { %1277 = vmatpush1.bf16.msra.mxu1 %v1276_v38  ;;  %v594_v38 = vrot.slane %v2053_v53, %v593_v34 }
 0x1da   : > { %1279 = vmatprep.subr.bf16.mxu1 %v1278_v39  ;;  %v598_v39 = vrot.slane %v2053_v53, %v597_v35 }
 0x1dd   : > { %1281 = vmatpush1.bf16.msra.mxu1 %v1280_v44 }
 0x1de   : > { %1283 = vmatprep.subr.bf16.mxu1 %v1282_v45 }
 0x1e1   : > { %1285 = vmatpush1.bf16.msra.mxu1 %v1284_v48 }
 0x1e4   : > { %885 = vmatmul.mubr.f32.vlgmr.msra.gmra.mrb[4].mxu1 %v1982_v24  ;;  %v574_v24 = vrot.slane %v2053_v53, %v573_v54 }
 0x277   : > { %v673_v59 = vpop.f32.mrb[0].mxu1  ;;  %v815_v60 = vpop.f32.mrb[2].mxu0 }
 0x278   : > { %v674_v61 = vadd.f32 %v673_v59, %v570_v56  ;;  %v816_v62 = vadd.f32 %v815_v60, %v586_v57  ;;  %v675_v63 = vpop.f32.mrb[1].mxu1  ;;  %v817_v2 = vpop.f32.mrb[3].mxu0 }
 0x279   : > { %v676_v3 = vadd.f32 %v675_v63, %v574_v24  ;;  %v818_v4 = vadd.f32 %v817_v2, %v590_v58 }
 0x27a   : > { %v1106_v5 = vmul.f32 -1.442695, %v674_v61  ;;  %v1110_v6 = vmul.f32 -1.442695, %v816_v62 }
 0x27b   : > { %v1107_v7 = vmul.f32 -1.442695, %v676_v3  ;;  %v1111_v8 = vmul.f32 -1.442695, %v818_v4 }
 0x27c   : > { %1381 = vpow2.f32 %v1106_v5 }
 0x27d   : > { %1383 = vpow2.f32 %v1110_v6 }
 0x27e   : > { %1385 = vpow2.f32 %v1107_v7 }
 0x27f   : > { %1387 = vpow2.f32 %v1111_v8 }
 0x286   : > { %v1382_v9 = vpop.eup %1381 }
 0x287   : > { %v1384_v10 = vpop.eup %1383  ;;  %v915_v11 = vadd.f32 1.0, %v1382_v9 }
 0x288   : > { %v1386_v12 = vpop.eup %1385  ;;  %v919_v13 = vadd.f32 1.0, %v1384_v10 }
 0x289   : > { %v1388_v14 = vpop.eup %1387  ;;  %1389 = vrcp.f32 %v915_v11  ;;  %v916_v15 = vadd.f32 1.0, %v1386_v12 }
 0x28a   : > { %1391 = vrcp.f32 %v919_v13  ;;  %v920_v16 = vadd.f32 1.0, %v1388_v14 }
 0x28b   : > { %1393 = vrcp.f32 %v916_v15 }
 0x28c   : > { %1395 = vrcp.f32 %v920_v16 }
 0x293   : > { %v1390_v19 = vpop.eup %1389 }
 0x294   : > { %v1392_v20 = vpop.eup %1391  ;;  %939 = vst [vmem:[%s2064_s10] sm:$0xff] %v1390_v19 }
 0x295   : > { %v1394_v22 = vpop.eup %1393  ;;  %943 = vst [vmem:[%s2064_s10 + $0x20] sm:$0xff] %v1392_v20 }
 0x296   : > { %v1396_v25 = vpop.eup %1395  ;;  %940 = vst [vmem:[%s2064_s10 + $0x8] sm:$0xff] %v1394_v22 }
 0x297   : > { %944 = vst [vmem:[%s2064_s10 + $0x28] sm:$0xff] %v1396_v25  ;;  %v744_v26 = vpop.f32.mrb[2].mxu1 }
 0x298   : > { %v745_v1 = vadd.f32 %v744_v26, %v578_v21  ;;  %v746_v27 = vpop.f32.mrb[3].mxu1 }
 0x299   : > { %v747_v28 = vadd.f32 %v746_v27, %v582_v23 }
 0x29a   : > { %v1108_v29 = vmul.f32 -1.442695, %v745_v1 }
 0x29b   : > { %v1109_v0 = vmul.f32 -1.442695, %v747_v28 }
 0x29c   : > { %1397 = vpow2.f32 %v1108_v29 }
 0x29d   : > { %1399 = vpow2.f32 %v1109_v0 }
 0x2a6   : > { %v1398_v30 = vpop.eup %1397 }
 0x2a7   : > { %v1400_v31 = vpop.eup %1399  ;;  %v917_v32 = vadd.f32 1.0, %v1398_v30 }
 0x2a8   : > { %v918_v33 = vadd.f32 1.0, %v1400_v31 }
 0x2a9   : > { %1401 = vrcp.f32 %v917_v32 }
 0x2aa   : > { %1403 = vrcp.f32 %v918_v33 }
 0x2b3   : > { %v1402_v36 = vpop.eup %1401 }
 0x2b4   : > { %v1404_v37 = vpop.eup %1403  ;;  %941 = vst [vmem:[%s2064_s10 + $0x10] sm:$0xff] %v1402_v36 }
 0x2b5   : > { %942 = vst [vmem:[%s2064_s10 + $0x18] sm:$0xff] %v1404_v37 }
 0x2b7   : > { %v886_v40 = vpop.f32.mrb[4].mxu1 }
 0x2b8   : > { %v887_v41 = vadd.f32 %v886_v40, %v594_v38  ;;  %v888_v42 = vpop.f32.mrb[5].mxu1 }
 0x2b9   : > { %v889_v43 = vadd.f32 %v888_v42, %v598_v39 }
 0x2ba   : > { %v1112_v44 = vmul.f32 -1.442695, %v887_v41 }
 0x2bb   : > { %v1113_v45 = vmul.f32 -1.442695, %v889_v43 }
 0x2bc   : > { %1405 = vpow2.f32 %v1112_v44 }
 0x2bd   : > { %1407 = vpow2.f32 %v1113_v45 }
 0x2c6   : > { %v1406_v46 = vpop.eup %1405 }
 0x2c7   : > { %v1408_v47 = vpop.eup %1407  ;;  %v921_v48 = vadd.f32 1.0, %v1406_v46 }
 0x2c8   : > { %v922_v49 = vadd.f32 1.0, %v1408_v47 }
 0x2c9   : > { %1409 = vrcp.f32 %v921_v48 }
 0x2ca   : > { %1411 = vrcp.f32 %v922_v49 }
 0x2d3   : > { %v1410_v50 = vpop.eup %1409 }
 0x2d4   : > { %v1412_v51 = vpop.eup %1411  ;;  %945 = vst [vmem:[%s2064_s10 + $0x30] sm:$0xff] %v1410_v50 }
 0x2d5   : > { %946 = vst [vmem:[%s2064_s10 + $0x38] sm:$0xff] %v1412_v51 }
 0x2d6   : > { %1542 = shalt.err (!%p1539_p3)
}
 0x2d7   : > { %s1543_s9 = scalar_lea.hbm %s2083_s14, 1024  ;;  %s1547_s27 = scalar_lea.hbm %s2139_s5, 2048 }
 0x2d8   : > { %p1544_p1 = scmp.ne.s32.totalorder %s2083_s14, %s1543_s9  ;;  %p1548_p13 = scmp.lt.u32.totalorder %s2083_s14, %s2139_s5 }
 0x2d9   : > { %p1549_p6 = scmp.lt.u32.totalorder %s1547_s27, %s1543_s9  ;;  %p1551_p5 = scmp.lt.u32.totalorder %s1543_s9, %s2083_s14 }
 0x2da   : > { %p1545_p7 = pnand %p1544_p1, %p2181_p11 }
 0x2db   : > { %p1550_p12 = por %p1549_p6, %p1548_p13 }
 0x2dc   : > { %p1546_p8 = pneg %p1545_p7 }
 0x2dd   : > { %p1552_p4 = por %p1551_p5, %p1550_p12 }
 0x2df   : > { %p1553_p9 = pnand %p1552_p4, %p1546_p8 }
 0x2e1   : > { %1556 = shalt.err (!%p1553_p9)
}
 0x2e2   : > { %1298 = dma.vmem_to_hbm [thread:$0]  (%p2181_p11), %s2085_s7, 1024, %s2083_s14, %s948_s8  }
 0x2e3 PF: > { %s2182_s28 = sld [smem:[#allocation14_spill]]  ;;  %s976_s15 = sand.u32 1, %s1599_s18  }
 0x2e4   : > { %p2184_p2 = scmp.ge.s32.totalorder %s1619_s23, 2  ;;  %s977_s26 = scalar_lea.sflag [#allocation4], %s976_s15 }
 0x2e9   : > { %p2183_p10 = scmp.ne.s32.totalorder %s2182_s28, 0 }
 0x2eb   : > { %p1315_p0 = pnand %p2184_p2, %p2183_p10 }
 0x2ed   : > { %1594 = dma.done.wait (!%p1315_p0), %s977_s26, 1024  }
 0x2ee   : > { %1596 = vsyncadd (!%p1315_p0), %s977_s26, 4294966272  ;;  %s20_s23 = sadd.s32 1, %s1619_s23   ;;  %s2185_s29 = sld [smem:[#allocation16_spill]] }
 0x2ef   : > { %p17_p3 = scmp.ge.s32.totalorder %s20_s23, 4   ;;  %s2186_s30 = sld [smem:[#allocation15_spill]] }
 0x2f0   : > { %s2187_s18 = smov %s1603_s19  ;;  %s2188_s19 = smov %s1607_s20 }
 0x2f1   : > { %s2190_s21 = smov %s1615_s22  ;;  %19 = sbr.rel (!%p17_p3) target bundleno = 9 (0x9), region = 104 }
 0x2f4   : > { %s2189_s20 = smov %s2185_s29 }
 0x2f5   : > { %s2191_s22 = smov %s2186_s30 }
 0x2f8   :  { %982 = vsyncpa [#allocation3], 1 }
 0x2f9   :  { %984 = vsyncpa [#allocation3 + $0x1], 1 }
 0x2fa   :  { %985 = vsyncpa [#allocation6], 1 }
 0x2fb   :  { %986 = vsyncpa [#allocation4], 1 }
 0x2fc   :  { %988 = vsyncpa [#allocation4 + $0x1], 1 }

</bundles_post_ra>
